<compile_context>
chip_gen: v7x
topology: tpu7x:2x2x1
jax: 0.10.0
libtpu: 0.0.40
codegen_flags: <defaults>
</compile_context>

<pallas_src>
import jax
import jax.numpy as jnp
from jax.experimental import pallas as pl
from jax.experimental.pallas import tpu as pltpu

ALPHA = 0.7
TEMPERATURE = 4.0
TEACHER_WEIGHTS = (1.0, 1.0, 1.0)
IGNORE_INDEX = 1
NUM_TEACHERS = len(TEACHER_WEIGHTS)
_NUM_SUMS = NUM_TEACHERS + 2  # [ce_sum, valid_count, kd_sum_0, kd_sum_1, kd_sum_2]


def _vmem_capacity_bytes():
    try:
        return int(pltpu.get_tpu_info().vmem_capacity_bytes)
    except Exception:
        return 64 << 20  # conservative fallback (v7x per-TensorCore VMEM)


def _choose_tn(N, V, itemsize):
    """Pick the row tile. Prefers a multiple of 8 that divides N (mask-free
    kernel) whose pipelined footprint fits a conservative VMEM budget."""
    cap = _vmem_capacity_bytes()
    budget = int(cap * 0.40)
    per_row = (
        2 * (1 + NUM_TEACHERS) * V * itemsize  # double-buffered logits tiles (native dtype)
        + 2 * 128 * 4                          # targets block lane-padded to 128 int32, x2 buffers
        + 5 * V * 4                            # live f32 (tn, V) temporaries after the KL rewrite
        + 16 * 128 * 4                         # (tn, 1) row temporaries, lane padded
    )
    max_tn = budget // per_row
    max_tn = int(max(8, min(max_tn, 1024)))
    if N <= max_tn:
        return int(N)
    t = (max_tn // 8) * 8
    while t >= 8:
        if N % t == 0:
            return int(t)                      # divides N -> no tail mask emitted
        t -= 8
    return int(max(8, (max_tn // 8) * 8))      # fallback: masked tail path


def _make_kernel(N, tn, V, num_teachers, need_mask):
    inv_t = 1.0 / TEMPERATURE

    def kernel(*refs):
        student_ref = refs[0]                     # (tn, V) native dtype
        teacher_refs = refs[1:1 + num_teachers]   # num_teachers x (tn, V)
        targets_ref = refs[1 + num_teachers]      # (tn, 1) int32
        out_ref = refs[2 + num_teachers]          # (1, 8, 128) f32: this tile's partial sums

        s = student_ref[...].astype(jnp.float32)  # (tn, V)
        tgt = targets_ref[...]                    # (tn, 1)

        if need_mask:
            i = pl.program_id(0)
            rows = jax.lax.broadcasted_iota(jnp.int32, (tn, 1), 0) + i * tn
            in_rows = rows < N
            s = jnp.where(in_rows, s, 0.0)
            tgt = jnp.where(in_rows, tgt, IGNORE_INDEX)

        # ---- shared student statistics (row max reused at both temperatures) ----
        m = jnp.max(s, axis=-1, keepdims=True)                   # (tn, 1)
        sm = s - m                                                # (tn, V) shared
        z1 = jnp.sum(jnp.exp(sm), axis=-1, keepdims=True)        # (tn, 1)
        st = sm * inv_t                                           # (tn, V) shared by all teachers
        zt = jnp.sum(jnp.exp(st), axis=-1, keepdims=True)        # (tn, 1)
        log_zt = jnp.log(zt)                                      # (tn, 1)

        # ---- cross entropy at T = 1 with ignore_index masking ----
        vocab_ids = jax.lax.broadcasted_iota(jnp.int32, (tn, V), 1)
        tgt_sm = jnp.sum(jnp.where(vocab_ids == tgt, sm, 0.0),
                         axis=-1, keepdims=True)                  # s[tgt] - m
        valid = (tgt != IGNORE_INDEX).astype(jnp.float32)         # (tn, 1)
        ce_partial = jnp.sum((jnp.log(z1) - tgt_sm) * valid)      # scalar
        cnt_partial = jnp.sum(valid)                              # scalar

        # ---- per-teacher KL(teacher || student), algebraically simplified ----
        #   kl_row = sum(te * (tt - st)) / tz + (log zt - log tz)
        kd_partials = []
        for ti in range(num_teachers):
            t = teacher_refs[ti][...].astype(jnp.float32)
            if need_mask:
                t = jnp.where(in_rows, t, 0.0)
            tmax = jnp.max(t, axis=-1, keepdims=True)
            tt = (t - tmax) * inv_t
            te = jnp.exp(tt)
            tz = jnp.sum(te, axis=-1, keepdims=True)
            num = jnp.sum(te * (tt - st), axis=-1, keepdims=True)
            kl_row = num / tz + (log_zt - jnp.log(tz))
            kd_partials.append(jnp.sum(kl_row))

        # ---- write this tile's partial sums as a lane-dense (8, 128) store ----
        vals = [ce_partial, cnt_partial] + kd_partials
        row_ids = jax.lax.broadcasted_iota(jnp.int32, (8, 128), 0)
        acc = jnp.zeros((8, 128), jnp.float32)
        for k, v in enumerate(vals):
            acc = acc + jnp.where(row_ids == k, v, 0.0)
        out_ref[0] = acc

    return kernel


def multi_teacher_distillation_loss(student_logits, teacher_logits_list, targets,
                                    *, tn=None):
    """student_logits: (B, S, V); teacher_logits_list: list of 3 x (B, S, V);
    targets: (B, S) int.  Returns (total_loss, ce_loss, total_kd_loss).

    Logits are read in their native dtype (bf16 recommended on v5e/v6e) and
    upcast to f32 inside the kernel."""
    B, S, V = student_logits.shape
    N = B * S
    assert len(teacher_logits_list) == NUM_TEACHERS

    # Reshapes are free; no dtype cast, no stacking.
    student_2d = student_logits.reshape(N, V)
    teachers_2d = [t.reshape(N, V) for t in teacher_logits_list]
    targets_2d = targets.reshape(N, 1).astype(jnp.int32)

    if tn is None:
        tn = _choose_tn(N, V, jnp.dtype(student_logits.dtype).itemsize)
    tn = int(tn)
    num_tiles = (N + tn - 1) // tn
    need_mask = (N % tn) != 0

    cap = _vmem_capacity_bytes()
    vmem_limit = max(32 << 20, min(int(cap * 0.85), 128 << 20))

    kernel = _make_kernel(N, tn, V, NUM_TEACHERS, need_mask)

    in_specs = [pl.BlockSpec((tn, V), lambda i: (i, 0))
                for _ in range(1 + NUM_TEACHERS)]
    in_specs.append(pl.BlockSpec((tn, 1), lambda i: (i, 0)))

    out = pl.pallas_call(
        kernel,
        out_shape=jax.ShapeDtypeStruct((num_tiles, 8, 128), jnp.float32),
        grid=(num_tiles,),
        in_specs=in_specs,
        out_specs=pl.BlockSpec((1, 8, 128), lambda i: (i, 0, 0)),
        compiler_params=pltpu.CompilerParams(
            dimension_semantics=("parallel",),
            vmem_limit_bytes=vmem_limit,
        ),
    )(student_2d, *teachers_2d, targets_2d)

    # Tiny per-tile reduction in the wrapper (num_tiles x 5 floats).
    sums = jnp.sum(out[:, :, 0], axis=0)              # (8,)
    ce_sum, ce_cnt = sums[0], sums[1]
    ce_loss = ce_sum / ce_cnt                          # mean over non-ignored tokens

    total_kd = jnp.float32(0.0)
    for ti in range(NUM_TEACHERS):
        kd_loss = (sums[2 + ti] / N) * (TEMPERATURE ** 2)   # 'batchmean' * T^2
        total_kd = total_kd + TEACHER_WEIGHTS[ti] * kd_loss
    total_kd = total_kd / sum(TEACHER_WEIGHTS)

    total_loss = (1.0 - ALPHA) * ce_loss + ALPHA * total_kd
    return total_loss, ce_loss, total_kd


def _reference(student_logits, teacher_logits_list, targets):
    """Pure-JAX reference matching the PyTorch module."""
    B, S, V = student_logits.shape
    s2 = student_logits.reshape(-1, V).astype(jnp.float32)
    t1 = targets.reshape(-1)
    logp = jax.nn.log_softmax(s2, axis=-1)
    nll = -jnp.take_along_axis(logp, t1[:, None], axis=-1)[:, 0]
    valid = (t1 != IGNORE_INDEX).astype(jnp.float32)
    ce = jnp.sum(nll * valid) / jnp.sum(valid)
    s_soft = jax.nn.log_softmax(s2 / TEMPERATURE, axis=-1)
    total_kd = 0.0
    for i, tl in enumerate(teacher_logits_list):
        t2 = tl.reshape(-1, V).astype(jnp.float32)
        p = jax.nn.softmax(t2 / TEMPERATURE, axis=-1)
        kd = jnp.sum(p * (jnp.log(p) - s_soft)) / s2.shape[0] * TEMPERATURE ** 2
        total_kd = total_kd + TEACHER_WEIGHTS[i] * kd
    total_kd = total_kd / sum(TEACHER_WEIGHTS)
    total = (1 - ALPHA) * ce + ALPHA * total_kd
    return total, ce, total_kd


def _close(a, b, tol=2e-4):
    return abs(float(a) - float(b)) <= tol + tol * abs(float(b))


if __name__ == "__main__":
    key = jax.random.PRNGKey(0)

    cases = [
        dict(B=2, S=8, V=128, tn=None),   # single tile, auto tn
        dict(B=2, S=32, V=256, tn=16),    # multi-tile, tn divides N (mask-free path)
        dict(B=4, S=10, V=192, tn=16),    # multi-tile with partial tail tile (mask path)
    ]

    for idx, c in enumerate(cases):
        B, S, V, tn = c["B"], c["S"], c["V"], c["tn"]
        ks = jax.random.split(jax.random.fold_in(key, idx), 5)
        student = jax.random.normal(ks[0], (B, S, V), dtype=jnp.float32)
        teachers = [
            jax.random.normal(ks[1], (B, S, V), dtype=jnp.float32),
            jax.random.normal(ks[2], (B, S, V), dtype=jnp.float32),
            jax.random.normal(ks[3], (B, S, V), dtype=jnp.float32),
        ]
        targets = jax.random.randint(ks[4], (B, S), 0, V, dtype=jnp.int32)
        # force some ignored positions (ignore_index = 1)
        targets = targets.at[0, 0].set(IGNORE_INDEX).at[B - 1, S - 1].set(IGNORE_INDEX)

        total, ce, kd = multi_teacher_distillation_loss(student, teachers, targets, tn=tn)
        jax.block_until_ready((total, ce, kd))

        rt, rc, rk = _reference(student, teachers, targets)
        assert _close(total, rt), (idx, float(total), float(rt))
        assert _close(ce, rc), (idx, float(ce), float(rc))
        assert _close(kd, rk), (idx, float(kd), float(rk))

    print("KERNEL_OK")
</pallas_src>

<mosaic_0001>
module attributes {stable_mosaic.version = 11 : i64} {
  func.func @kernel(%arg0: i32, %arg1: memref<16x128xf32, #tpu.memory_space<vmem>>, %arg2: memref<16x128xf32, #tpu.memory_space<vmem>>, %arg3: memref<16x128xf32, #tpu.memory_space<vmem>>, %arg4: memref<16x128xf32, #tpu.memory_space<vmem>>, %arg5: memref<16x1xi32, #tpu.memory_space<vmem>>, %arg6: memref<1x8x128xf32, #tpu.memory_space<vmem>>) attributes {dimension_semantics = [#tpu.dimension_semantics<parallel>], iteration_bounds = array<i64: 1>, scalar_prefetch = 0 : i64, scratch_operands = 0 : i64, tpu.core_type = #tpu.core_type<tc>, window_params = [{transform_indices = @transform_0, window_bounds = array<i64: 16, 128>}, {transform_indices = @transform_1, window_bounds = array<i64: 16, 128>}, {transform_indices = @transform_2, window_bounds = array<i64: 16, 128>}, {transform_indices = @transform_3, window_bounds = array<i64: 16, 128>}, {transform_indices = @transform_4, window_bounds = array<i64: 16, 1>}, {transform_indices = @transform_5, window_bounds = array<i64: 1, 8, 128>}]} {
    %c0 = arith.constant 0 : index
    %c0_0 = arith.constant 0 : index
    %0 = vector.load %arg1[%c0, %c0_0] : memref<16x128xf32, #tpu.memory_space<vmem>>, vector<16x128xf32>
    %c0_1 = arith.constant 0 : index
    %c0_2 = arith.constant 0 : index
    %1 = vector.load %arg5[%c0_1, %c0_2] : memref<16x1xi32, #tpu.memory_space<vmem>>, vector<16x1xi32>
    %cst = arith.constant dense<0xFF800000> : vector<16xf32>
    %2 = vector.multi_reduction <maximumf>, %0, %cst [1] : vector<16x128xf32> to vector<16xf32>
    %3 = vector.shape_cast %2 : vector<16xf32> to vector<16x1xf32>
    %4 = vector.broadcast %3 : vector<16x1xf32> to vector<16x128xf32>
    %5 = arith.subf %0, %4 : vector<16x128xf32>
    %6 = math.exp %5 : vector<16x128xf32>
    %cst_3 = arith.constant dense<0.000000e+00> : vector<16xf32>
    %7 = vector.multi_reduction <add>, %6, %cst_3 [1] : vector<16x128xf32> to vector<16xf32>
    %8 = vector.shape_cast %7 : vector<16xf32> to vector<16x1xf32>
    %cst_4 = arith.constant 2.500000e-01 : f32
    %9 = vector.broadcast %cst_4 : f32 to vector<16x128xf32>
    %10 = arith.mulf %5, %9 : vector<16x128xf32>
    %11 = math.exp %10 : vector<16x128xf32>
    %cst_5 = arith.constant dense<0.000000e+00> : vector<16xf32>
    %12 = vector.multi_reduction <add>, %11, %cst_5 [1] : vector<16x128xf32> to vector<16xf32>
    %13 = vector.shape_cast %12 : vector<16xf32> to vector<16x1xf32>
    %14 = math.log %13 : vector<16x1xf32>
    %15 = tpu.iota {dimensions = array<i32: 1>} : vector<16x128xi32>
    %16 = vector.broadcast %1 : vector<16x1xi32> to vector<16x128xi32>
    %17 = arith.cmpi eq, %15, %16 : vector<16x128xi32>
    %cst_6 = arith.constant 0.000000e+00 : f32
    %18 = vector.broadcast %cst_6 : f32 to vector<16x128xf32>
    %19 = arith.select %17, %5, %18 : vector<16x128xi1>, vector<16x128xf32>
    %cst_7 = arith.constant dense<0.000000e+00> : vector<16xf32>
    %20 = vector.multi_reduction <add>, %19, %cst_7 [1] : vector<16x128xf32> to vector<16xf32>
    %21 = vector.shape_cast %20 : vector<16xf32> to vector<16x1xf32>
    %c1_i32 = arith.constant 1 : i32
    %22 = vector.broadcast %c1_i32 : i32 to vector<16x1xi32>
    %23 = arith.cmpi ne, %1, %22 : vector<16x1xi32>
    %24 = arith.extui %23 : vector<16x1xi1> to vector<16x1xi32>
    %25 = arith.sitofp %24 : vector<16x1xi32> to vector<16x1xf32>
    %26 = math.log %8 : vector<16x1xf32>
    %27 = arith.subf %26, %21 : vector<16x1xf32>
    %28 = arith.mulf %27, %25 : vector<16x1xf32>
    %29 = vector.shape_cast %28 : vector<16x1xf32> to vector<1x16x1xf32>
    %cst_8 = arith.constant dense<0.000000e+00> : vector<1xf32>
    %30 = vector.multi_reduction <add>, %29, %cst_8 [1, 2] : vector<1x16x1xf32> to vector<1xf32>
    %31 = vector.shape_cast %30 : vector<1xf32> to vector<1x1x1xf32>
    %32 = vector.extract %31[0, 0, 0] : f32 from vector<1x1x1xf32>
    %33 = vector.shape_cast %25 : vector<16x1xf32> to vector<1x16x1xf32>
    %cst_9 = arith.constant dense<0.000000e+00> : vector<1xf32>
    %34 = vector.multi_reduction <add>, %33, %cst_9 [1, 2] : vector<1x16x1xf32> to vector<1xf32>
    %35 = vector.shape_cast %34 : vector<1xf32> to vector<1x1x1xf32>
    %36 = vector.extract %35[0, 0, 0] : f32 from vector<1x1x1xf32>
    %c0_10 = arith.constant 0 : index
    %c0_11 = arith.constant 0 : index
    %37 = vector.load %arg2[%c0_10, %c0_11] : memref<16x128xf32, #tpu.memory_space<vmem>>, vector<16x128xf32>
    %cst_12 = arith.constant dense<0xFF800000> : vector<16xf32>
    %38 = vector.multi_reduction <maximumf>, %37, %cst_12 [1] : vector<16x128xf32> to vector<16xf32>
    %39 = vector.shape_cast %38 : vector<16xf32> to vector<16x1xf32>
    %40 = vector.broadcast %39 : vector<16x1xf32> to vector<16x128xf32>
    %41 = arith.subf %37, %40 : vector<16x128xf32>
    %cst_13 = arith.constant 2.500000e-01 : f32
    %42 = vector.broadcast %cst_13 : f32 to vector<16x128xf32>
    %43 = arith.mulf %41, %42 : vector<16x128xf32>
    %44 = math.exp %43 : vector<16x128xf32>
    %cst_14 = arith.constant dense<0.000000e+00> : vector<16xf32>
    %45 = vector.multi_reduction <add>, %44, %cst_14 [1] : vector<16x128xf32> to vector<16xf32>
    %46 = vector.shape_cast %45 : vector<16xf32> to vector<16x1xf32>
    %47 = arith.subf %43, %10 : vector<16x128xf32>
    %48 = arith.mulf %44, %47 : vector<16x128xf32>
    %cst_15 = arith.constant dense<0.000000e+00> : vector<16xf32>
    %49 = vector.multi_reduction <add>, %48, %cst_15 [1] : vector<16x128xf32> to vector<16xf32>
    %50 = vector.shape_cast %49 : vector<16xf32> to vector<16x1xf32>
    %51 = arith.divf %50, %46 : vector<16x1xf32>
    %52 = math.log %46 : vector<16x1xf32>
    %53 = arith.subf %14, %52 : vector<16x1xf32>
    %54 = arith.addf %51, %53 : vector<16x1xf32>
    %55 = vector.shape_cast %54 : vector<16x1xf32> to vector<1x16x1xf32>
    %cst_16 = arith.constant dense<0.000000e+00> : vector<1xf32>
    %56 = vector.multi_reduction <add>, %55, %cst_16 [1, 2] : vector<1x16x1xf32> to vector<1xf32>
    %57 = vector.shape_cast %56 : vector<1xf32> to vector<1x1x1xf32>
    %58 = vector.extract %57[0, 0, 0] : f32 from vector<1x1x1xf32>
    %c0_17 = arith.constant 0 : index
    %c0_18 = arith.constant 0 : index
    %59 = vector.load %arg3[%c0_17, %c0_18] : memref<16x128xf32, #tpu.memory_space<vmem>>, vector<16x128xf32>
    %cst_19 = arith.constant dense<0xFF800000> : vector<16xf32>
    %60 = vector.multi_reduction <maximumf>, %59, %cst_19 [1] : vector<16x128xf32> to vector<16xf32>
    %61 = vector.shape_cast %60 : vector<16xf32> to vector<16x1xf32>
    %62 = vector.broadcast %61 : vector<16x1xf32> to vector<16x128xf32>
    %63 = arith.subf %59, %62 : vector<16x128xf32>
    %cst_20 = arith.constant 2.500000e-01 : f32
    %64 = vector.broadcast %cst_20 : f32 to vector<16x128xf32>
    %65 = arith.mulf %63, %64 : vector<16x128xf32>
    %66 = math.exp %65 : vector<16x128xf32>
    %cst_21 = arith.constant dense<0.000000e+00> : vector<16xf32>
    %67 = vector.multi_reduction <add>, %66, %cst_21 [1] : vector<16x128xf32> to vector<16xf32>
    %68 = vector.shape_cast %67 : vector<16xf32> to vector<16x1xf32>
    %69 = arith.subf %65, %10 : vector<16x128xf32>
    %70 = arith.mulf %66, %69 : vector<16x128xf32>
    %cst_22 = arith.constant dense<0.000000e+00> : vector<16xf32>
    %71 = vector.multi_reduction <add>, %70, %cst_22 [1] : vector<16x128xf32> to vector<16xf32>
    %72 = vector.shape_cast %71 : vector<16xf32> to vector<16x1xf32>
    %73 = arith.divf %72, %68 : vector<16x1xf32>
    %74 = math.log %68 : vector<16x1xf32>
    %75 = arith.subf %14, %74 : vector<16x1xf32>
    %76 = arith.addf %73, %75 : vector<16x1xf32>
    %77 = vector.shape_cast %76 : vector<16x1xf32> to vector<1x16x1xf32>
    %cst_23 = arith.constant dense<0.000000e+00> : vector<1xf32>
    %78 = vector.multi_reduction <add>, %77, %cst_23 [1, 2] : vector<1x16x1xf32> to vector<1xf32>
    %79 = vector.shape_cast %78 : vector<1xf32> to vector<1x1x1xf32>
    %80 = vector.extract %79[0, 0, 0] : f32 from vector<1x1x1xf32>
    %c0_24 = arith.constant 0 : index
    %c0_25 = arith.constant 0 : index
    %81 = vector.load %arg4[%c0_24, %c0_25] : memref<16x128xf32, #tpu.memory_space<vmem>>, vector<16x128xf32>
    %cst_26 = arith.constant dense<0xFF800000> : vector<16xf32>
    %82 = vector.multi_reduction <maximumf>, %81, %cst_26 [1] : vector<16x128xf32> to vector<16xf32>
    %83 = vector.shape_cast %82 : vector<16xf32> to vector<16x1xf32>
    %84 = vector.broadcast %83 : vector<16x1xf32> to vector<16x128xf32>
    %85 = arith.subf %81, %84 : vector<16x128xf32>
    %cst_27 = arith.constant 2.500000e-01 : f32
    %86 = vector.broadcast %cst_27 : f32 to vector<16x128xf32>
    %87 = arith.mulf %85, %86 : vector<16x128xf32>
    %88 = math.exp %87 : vector<16x128xf32>
    %cst_28 = arith.constant dense<0.000000e+00> : vector<16xf32>
    %89 = vector.multi_reduction <add>, %88, %cst_28 [1] : vector<16x128xf32> to vector<16xf32>
    %90 = vector.shape_cast %89 : vector<16xf32> to vector<16x1xf32>
    %91 = arith.subf %87, %10 : vector<16x128xf32>
    %92 = arith.mulf %88, %91 : vector<16x128xf32>
    %cst_29 = arith.constant dense<0.000000e+00> : vector<16xf32>
    %93 = vector.multi_reduction <add>, %92, %cst_29 [1] : vector<16x128xf32> to vector<16xf32>
    %94 = vector.shape_cast %93 : vector<16xf32> to vector<16x1xf32>
    %95 = arith.divf %94, %90 : vector<16x1xf32>
    %96 = math.log %90 : vector<16x1xf32>
    %97 = arith.subf %14, %96 : vector<16x1xf32>
    %98 = arith.addf %95, %97 : vector<16x1xf32>
    %99 = vector.shape_cast %98 : vector<16x1xf32> to vector<1x16x1xf32>
    %cst_30 = arith.constant dense<0.000000e+00> : vector<1xf32>
    %100 = vector.multi_reduction <add>, %99, %cst_30 [1, 2] : vector<1x16x1xf32> to vector<1xf32>
    %101 = vector.shape_cast %100 : vector<1xf32> to vector<1x1x1xf32>
    %102 = vector.extract %101[0, 0, 0] : f32 from vector<1x1x1xf32>
    %103 = tpu.iota {dimensions = array<i32: 0>} : vector<8x128xi32>
    %cst_31 = arith.constant 0.000000e+00 : f32
    %104 = vector.broadcast %cst_31 : f32 to vector<8x128xf32>
    %c0_i32 = arith.constant 0 : i32
    %105 = vector.broadcast %c0_i32 : i32 to vector<8x128xi32>
    %106 = arith.cmpi eq, %103, %105 : vector<8x128xi32>
    %cst_32 = arith.constant 0.000000e+00 : f32
    %107 = vector.broadcast %32 : f32 to vector<8x128xf32>
    %108 = vector.broadcast %cst_32 : f32 to vector<8x128xf32>
    %109 = arith.select %106, %107, %108 : vector<8x128xi1>, vector<8x128xf32>
    %110 = arith.addf %104, %109 : vector<8x128xf32>
    %c1_i32_33 = arith.constant 1 : i32
    %111 = vector.broadcast %c1_i32_33 : i32 to vector<8x128xi32>
    %112 = arith.cmpi eq, %103, %111 : vector<8x128xi32>
    %cst_34 = arith.constant 0.000000e+00 : f32
    %113 = vector.broadcast %36 : f32 to vector<8x128xf32>
    %114 = vector.broadcast %cst_34 : f32 to vector<8x128xf32>
    %115 = arith.select %112, %113, %114 : vector<8x128xi1>, vector<8x128xf32>
    %116 = arith.addf %110, %115 : vector<8x128xf32>
    %c2_i32 = arith.constant 2 : i32
    %117 = vector.broadcast %c2_i32 : i32 to vector<8x128xi32>
    %118 = arith.cmpi eq, %103, %117 : vector<8x128xi32>
    %cst_35 = arith.constant 0.000000e+00 : f32
    %119 = vector.broadcast %58 : f32 to vector<8x128xf32>
    %120 = vector.broadcast %cst_35 : f32 to vector<8x128xf32>
    %121 = arith.select %118, %119, %120 : vector<8x128xi1>, vector<8x128xf32>
    %122 = arith.addf %116, %121 : vector<8x128xf32>
    %c3_i32 = arith.constant 3 : i32
    %123 = vector.broadcast %c3_i32 : i32 to vector<8x128xi32>
    %124 = arith.cmpi eq, %103, %123 : vector<8x128xi32>
    %cst_36 = arith.constant 0.000000e+00 : f32
    %125 = vector.broadcast %80 : f32 to vector<8x128xf32>
    %126 = vector.broadcast %cst_36 : f32 to vector<8x128xf32>
    %127 = arith.select %124, %125, %126 : vector<8x128xi1>, vector<8x128xf32>
    %128 = arith.addf %122, %127 : vector<8x128xf32>
    %c4_i32 = arith.constant 4 : i32
    %129 = vector.broadcast %c4_i32 : i32 to vector<8x128xi32>
    %130 = arith.cmpi eq, %103, %129 : vector<8x128xi32>
    %cst_37 = arith.constant 0.000000e+00 : f32
    %131 = vector.broadcast %102 : f32 to vector<8x128xf32>
    %132 = vector.broadcast %cst_37 : f32 to vector<8x128xf32>
    %133 = arith.select %130, %131, %132 : vector<8x128xi1>, vector<8x128xf32>
    %134 = arith.addf %128, %133 : vector<8x128xf32>
    %c0_38 = arith.constant 0 : index
    %c0_39 = arith.constant 0 : index
    %c0_40 = arith.constant 0 : index
    %135 = vector.load %arg6[%c0_38, %c0_39, %c0_40] : memref<1x8x128xf32, #tpu.memory_space<vmem>>, vector<1x8x128xf32>
    %136 = vector.shape_cast %135 : vector<1x8x128xf32> to vector<8x128xf32>
    %137 = vector.shape_cast %134 : vector<8x128xf32> to vector<1x8x128xf32>
    tpu.vector_store %arg6[%c0_38, %c0_39, %c0_40], %137 {strides = array<i32>} : memref<1x8x128xf32, #tpu.memory_space<vmem>>, vector<1x8x128xf32>,
    return
  }
  func.func @transform_0(%arg0: i32) -> (i32, i32) {
    %c0_i32 = arith.constant 0 : i32
    %c0_i32_0 = arith.constant 0 : i32
    return %arg0, %c0_i32 : i32, i32
  }
  func.func @transform_1(%arg0: i32) -> (i32, i32) {
    %c0_i32 = arith.constant 0 : i32
    %c0_i32_0 = arith.constant 0 : i32
    return %arg0, %c0_i32 : i32, i32
  }
  func.func @transform_2(%arg0: i32) -> (i32, i32) {
    %c0_i32 = arith.constant 0 : i32
    %c0_i32_0 = arith.constant 0 : i32
    return %arg0, %c0_i32 : i32, i32
  }
  func.func @transform_3(%arg0: i32) -> (i32, i32) {
    %c0_i32 = arith.constant 0 : i32
    %c0_i32_0 = arith.constant 0 : i32
    return %arg0, %c0_i32 : i32, i32
  }
  func.func @transform_4(%arg0: i32) -> (i32, i32) {
    %c0_i32 = arith.constant 0 : i32
    %c0_i32_0 = arith.constant 0 : i32
    return %arg0, %c0_i32 : i32, i32
  }
  func.func @transform_5(%arg0: i32) -> (i32, i32, i32) {
    %c0_i32 = arith.constant 0 : i32
    %c0_i32_0 = arith.constant 0 : i32
    %c0_i32_1 = arith.constant 0 : i32
    return %arg0, %c0_i32, %c0_i32_0 : i32, i32, i32
  }
}

</mosaic_0001>

<bundles_post_ra>
// kernel: tpu_custom_call.1
= control target key start
LH: loop header
LB: loop body
LE: loop exit
PB: predicated region body
PF: predicated region fallthrough
CT: control target
= control target key end

     0   :  { %10 = vsyncpa [#allocation3], 0  ;;  %s661_s0 = inlined_call_operand.vmem [shape: f32[16,128], index: 0, kind: input, shape index: {}]   ;;  %s662_s1 = inlined_call_operand.hbm [shape: f32[16,128], index: 1, kind: input, shape index: {}]   ;;  %s663_s2 = inlined_call_operand.hbm [shape: f32[16,128], index: 2, kind: input, shape index: {}]   ;;  %s664_s3 = inlined_call_operand.hbm [shape: f32[16,128], index: 3, kind: input, shape index: {}]   ;;  %s665_s4 = inlined_call_operand.vmem [shape: s32[16,1], index: 4, kind: input, shape index: {}]   ;;  %s666_s5 = inlined_call_operand.hbm [shape: f32[1,8,128], index: 5, kind: output, shape index: {}]  }
   0x1   :  { %11 = vsyncpa [#allocation6], 0 }
   0x2   :  { %12 = vsyncpa [#allocation4], 0  ;;  %s506_s18 = smov [#allocation5]   ;;  %s507_s20 = smov [#allocation2]  }
   0x3   :  { %s32_s19 = sshll.u32 %s506_s18, 4  ;;  %s20_s21 = sshll.u32 %s507_s20, 4  ;;  %s33_s19 = int_to_ptr.vmem [resolvable:$true] %s32_s19  ;;  %s544_s21 = int_to_ptr.vmem [resolvable:$true] %s20_s21 }
   0x4   :  { %s412_s24 = scalar_lea.hbm %s663_s2, 256 }
   0x5   :  { %p413_p0 = scmp.ne.s32.totalorder %s663_s2, %s412_s24  ;;  %p416_p1 = scmp.lt.u32.totalorder %s412_s24, %s663_s2 }
   0x7   :  { %p418_p2 = pnand %p416_p1, %p413_p0 }
   0x9   :  { %421 = shalt.err (!%p418_p2)
}
   0xa   :  { %s422_s29 = scalar_lea.vmem %s33_s19, 256  ;;  %p427_p4 = scmp.lt.s32.totalorder %s33_s19, %s33_s19 }
   0xb   :  { %p423_p3 = scmp.ne.s32.totalorder %s33_s19, %s422_s29  ;;  %p428_p5 = scmp.lt.s32.totalorder %s422_s29, %s422_s29 }
   0xd   :  { %p429_p6 = por %p428_p5, %p427_p4 }
   0xf   :  { %p430_p7 = pnand %p429_p6, %p423_p3 }
  0x11   :  { %433 = shalt.err (!%p430_p7)
}
  0x12   :  { %s508_s30 = smov 128   ;;  %s509_s6 = smov 8  }
  0x13   :  { %38 = dma.hbm_to_vmem [thread:$0]  %s663_s2, 256, %s33_s19, [#allocation6], %s508_s30, %s508_s30, %s509_s6  }
  0x14   :  { %s434_s11 = scalar_lea.hbm %s662_s1, 256 }
  0x15   :  { %p435_p8 = scmp.ne.s32.totalorder %s662_s1, %s434_s11  ;;  %p438_p9 = scmp.lt.u32.totalorder %s434_s11, %s662_s1 }
  0x17   :  { %p440_p10 = pnand %p438_p9, %p435_p8 }
  0x19   :  { %443 = shalt.err (!%p440_p10)
}
  0x1a   :  { %s444_s16 = scalar_lea.vmem %s544_s21, 256  ;;  %p449_p12 = scmp.lt.s32.totalorder %s544_s21, %s544_s21 }
  0x1b   :  { %p445_p11 = scmp.ne.s32.totalorder %s544_s21, %s444_s16  ;;  %p450_p13 = scmp.lt.s32.totalorder %s444_s16, %s444_s16 }
  0x1d   :  { %p451_p0 = por %p450_p13, %p449_p12 }
  0x1f   :  { %p452_p1 = pnand %p451_p0, %p445_p11 }
  0x21   :  { %455 = shalt.err (!%p452_p1)
}
  0x22   :  { %26 = dma.hbm_to_vmem [thread:$0]  %s662_s1, 256, %s544_s21, [#allocation3], %s508_s30, %s508_s30, %s509_s6  }
  0x23   :  { %s510_s18 = smov [#allocation7]   ;;  %s456_s23 = scalar_lea.hbm %s664_s3, 256 }
  0x24   :  { %s44_s19 = sshll.u32 %s510_s18, 4  ;;  %p457_p2 = scmp.ne.s32.totalorder %s664_s3, %s456_s23  ;;  %s45_s19 = int_to_ptr.vmem [resolvable:$true] %s44_s19 }
  0x25   :  { %p460_p3 = scmp.lt.u32.totalorder %s456_s23, %s664_s3 }
  0x27   :  { %p462_p4 = pnand %p460_p3, %p457_p2 }
  0x29   :  { %465 = shalt.err (!%p462_p4)
}
  0x2a   :  { %s466_s28 = scalar_lea.vmem %s45_s19, 256  ;;  %p471_p6 = scmp.lt.s32.totalorder %s45_s19, %s45_s19 }
  0x2b   :  { %p467_p5 = scmp.ne.s32.totalorder %s45_s19, %s466_s28  ;;  %p472_p7 = scmp.lt.s32.totalorder %s466_s28, %s466_s28 }
  0x2d   :  { %p473_p8 = por %p472_p7, %p471_p6 }
  0x2f   :  { %p474_p9 = pnand %p473_p8, %p467_p5 }
  0x31   :  { %477 = shalt.err (!%p474_p9)
}
  0x32   :  { %50 = dma.hbm_to_vmem [thread:$0]  %s664_s3, 256, %s45_s19, [#allocation6], %s508_s30, %s508_s30, %s509_s6  }
  0x33   :  { %500 = dma.done.wait [#allocation3], 256  }
  0x34   :  { %501 = vsyncadd [#allocation3], 4294967040 }
  0x35   :  { %502 = dma.done.wait [#allocation6], 512  }
  0x36   :  { %503 = vsyncadd [#allocation6], 4294966784  ;;  %v511_v0 = vmov 0   ;;  %v149_v1 = vld [vmem:[#allocation2] sm:$0xff]  ;;  %v150_v3 = vld [vmem:[#allocation2 + $0x8] sm:$0xff]  ;;  %v94_v48 = vlaneseq  ;;  %vm124_vm4 = vcmask 7168  }
  0x37   :  { %359 = vset.pattern.permute.xlu1 %v511_v0  ;;  %358 = vset.pattern.permute.xlu0 %v511_v0  ;;  %v62_v2 = vld [vmem:[%s661_s0] sm:$0xff]  ;;  %v63_v4 = vld [vmem:[%s661_s0 + $0x8] sm:$0xff]  ;;  %v200_v5 = vld [vmem:[#allocation5 + $0x8] sm:$0xff]  ;;  %s513_s14 = smov [#allocation8]  }
  0x38   :  { %151 = vmax.xlane.f32.xlu1 %v149_v1  ;;  %66 = vmax.xlane.f32.xlu0 %v62_v2  ;;  %v199_v6 = vld [vmem:[#allocation5] sm:$0xff]  ;;  %v250_v7 = vld [vmem:[#allocation7 + $0x8] sm:$0xff]  ;;  %v249_v8 = vld [vmem:[#allocation7] sm:$0xff]  ;;  %v95_v53 = vand.u32 127, %v94_v48  ;;  %s328_s15 = sshll.u32 %s513_s14, 4  ;;  %s329_s15 = int_to_ptr.vmem [resolvable:$true] %s328_s15 }
  0x39   :  { %v605_v9 = vld [vmem:[%s665_s4 + $0x8] sm:$0xff]  ;;  %v611_v10 = vld [vmem:[%s665_s4] sm:$0xff]  ;;  %s478_s16 = scalar_lea.vmem %s329_s15, 128  ;;  %p483_p11 = scmp.lt.s32.totalorder %s329_s15, %s329_s15 }
  0x3a   :  { %vm111_vm2 = vcmp.ne.s32.totalorder %v605_v9, 1  ;;  %vm110_vm3 = vcmp.ne.s32.totalorder %v611_v10, 1  ;;  %p479_p10 = scmp.ne.s32.totalorder %s329_s15, %s478_s16  ;;  %p484_p12 = scmp.lt.s32.totalorder %s478_s16, %s478_s16 }
  0x3c   :  { %153 = vmax.xlane.f32.xlu1 %v150_v3  ;;  %68 = vmax.xlane.f32.xlu0 %v63_v4  ;;  %p485_p13 = por %p484_p12, %p483_p11 }
  0x3e   :  { %p486_p0 = pnand %p485_p13, %p479_p10 }
  0x40   :  { %203 = vmax.xlane.f32.xlu1 %v200_v5  ;;  %201 = vmax.xlane.f32.xlu0 %v199_v6 }
  0x44   :  { %253 = vmax.xlane.f32.xlu1 %v250_v7  ;;  %251 = vmax.xlane.f32.xlu0 %v249_v8 }
  0x55   :  { %100 = vperm.xlu1 %359, %v605_v9  }
  0x5a   :  { %97 = vperm.xlu0 %358, %v611_v10  }
  0xc5   :  { %v152_v11 = vpop.xlane.xlu1 %151  ;;  %v67_v12 = vpop.xlane.xlu0 %66 }
  0xc6   :  { %v70_v13 = vsub.f32 %v62_v2, %v67_v12  ;;  %v155_v17 = vsub.f32 %v149_v1, %v152_v11  ;;  %v512_v11 = vmov 0.0  }
  0xc7   :  { %v338_v12 = vsel %vm110_vm3, 1.0, %v512_v11 }
  0xc8   :  { %v72_v14 = vmul.f32 1.442695, %v70_v13  ;;  %v614_v15 = vmul.f32 0.25, %v70_v13  ;;  %v157_v25 = vmul.f32 0.25, %v155_v17 }
  0xc9   :  { %v69_v16 = vpop.xlane.xlu0 %68  ;;  %v154_v18 = vpop.xlane.xlu1 %153 }
  0xca   :  { %360 = vpow2.f32 %v72_v14  ;;  %v616_v19 = vsub.f32 %v63_v4, %v69_v16  ;;  %v82_v20 = vmul.f32 1.442695, %v614_v15  ;;  %v156_v23 = vsub.f32 %v150_v3, %v154_v18 }
  0xcb   :  { %v159_v30 = vmul.f32 1.442695, %v157_v25  ;;  %v167_v57 = vsub.f32 %v157_v25, %v614_v15  ;;  %v137_v14 = vsel %vm124_vm4, %v338_v12, 0.0 }
  0xcc   :  { %v74_v21 = vmul.f32 1.442695, %v616_v19  ;;  %v621_v22 = vmul.f32 0.25, %v616_v19  ;;  %362 = vpow2.f32 %v82_v20  ;;  %v624_v27 = vmul.f32 0.25, %v156_v23 }
  0xcd   :  { %v202_v24 = vpop.xlane.xlu0 %201  ;;  %v204_v28 = vpop.xlane.xlu1 %203 }
  0xce   :  { %364 = vpow2.f32 %v74_v21  ;;  %v84_v26 = vmul.f32 1.442695, %v621_v22  ;;  %v205_v31 = vsub.f32 %v199_v6, %v202_v24  ;;  %v161_v34 = vmul.f32 1.442695, %v624_v27 }
  0xcf   :  { %v206_v36 = vsub.f32 %v200_v5, %v204_v28  ;;  %v168_v3 = vsub.f32 %v624_v27, %v621_v22 }
  0xd0   :  { %366 = vpow2.f32 %v84_v26  ;;  %v207_v37 = vmul.f32 0.25, %v205_v31 }
  0xd1   :  { %v252_v29 = vpop.xlane.xlu0 %251  ;;  %368 = vpow2.f32 %v159_v30  ;;  %v254_v39 = vpop.xlane.xlu1 %253  ;;  %v208_v42 = vmul.f32 0.25, %v206_v36 }
  0xd2   :  { %v255_v32 = vsub.f32 %v249_v8, %v252_v29  ;;  %370 = vpow2.f32 %v161_v34  ;;  %v209_v43 = vmul.f32 1.442695, %v207_v37  ;;  %v256_v44 = vsub.f32 %v250_v7, %v254_v39 }
  0xd3   :  { %v211_v46 = vmul.f32 1.442695, %v208_v42  ;;  %v217_v60 = vsub.f32 %v207_v37, %v614_v15  ;;  %v218_v5 = vsub.f32 %v208_v42, %v621_v22 }
  0xd4   :  { %v361_v33 = vpop.eup %360  ;;  %v257_v35 = vmul.f32 0.25, %v255_v32  ;;  %v258_v47 = vmul.f32 0.25, %v256_v44 }
  0xd5   :  { %76 = vadd.xlane.f32.xlu1 %v361_v33  ;;  %v101_v61 = vpop.permute.xlu1 %100 }
  0xd6   :  { %v363_v38 = vpop.eup %362  ;;  %v259_v40 = vmul.f32 1.442695, %v257_v35  ;;  %v261_v50 = vmul.f32 1.442695, %v258_v47  ;;  %v267_v0 = vsub.f32 %v257_v35, %v614_v15  ;;  %vm103_vm1 = vcmp.eq.s32.totalorder %v95_v53, %v101_v61 }
  0xd7   :  { %v105_v2 = vsel %vm103_vm1, %v616_v19, 0.0  ;;  %v268_v7 = vsub.f32 %v258_v47, %v621_v22 }
  0xd8   :  { %v365_v41 = vpop.eup %364  ;;  %372 = vpow2.f32 %v259_v40 }
  0xd9   :  { %86 = vadd.xlane.f32.xlu1 %v363_v38  ;;  %78 = vadd.xlane.f32.xlu0 %v365_v41  ;;  %374 = vpow2.f32 %v209_v43  ;;  %v98_v51 = vpop.permute.xlu0 %97 }
  0xda   :  { %v367_v45 = vpop.eup %366  ;;  %376 = vpow2.f32 %v211_v46  ;;  %vm102_vm0 = vcmp.eq.s32.totalorder %v95_v53, %v98_v51 }
  0xdb   :  { %v369_v49 = vpop.eup %368  ;;  %378 = vpow2.f32 %v261_v50  ;;  %v104_v56 = vsel %vm102_vm0, %v70_v13, 0.0  ;;  %v339_v13 = vsel %vm111_vm2, 1.0, %v512_v11 }
  0xdc   :  { %v371_v52 = vpop.eup %370  ;;  %v169_v58 = vmul.f32 %v369_v49, %v167_v57  ;;  %v138_v15 = vsel %vm124_vm4, %v339_v13, 0.0 }
  0xdd   :  { %88 = vadd.xlane.f32.xlu1 %v367_v45  ;;  %v170_v4 = vmul.f32 %v371_v52, %v168_v3  ;;  %v139_v16 = vadd.f32 %v138_v15, %v137_v14 }
  0xe1   :  { %163 = vadd.xlane.f32.xlu1 %v369_v49 }
  0xe2   :  { %v373_v54 = vpop.eup %372 }
  0xe3   :  { %263 = vadd.xlane.f32.xlu0 %v373_v54  ;;  %v375_v55 = vpop.eup %374  ;;  %v269_v1 = vmul.f32 %v373_v54, %v267_v0 }
  0xe4   :  { %v377_v59 = vpop.eup %376  ;;  %v219_v62 = vmul.f32 %v375_v55, %v217_v60 }
  0xe5   :  { %165 = vadd.xlane.f32.xlu1 %v371_v52  ;;  %v379_v63 = vpop.eup %378  ;;  %v220_v6 = vmul.f32 %v377_v59, %v218_v5 }
  0xe6   :  { %v270_v8 = vmul.f32 %v379_v63, %v268_v7 }
  0xe7   :  { %106 = vadd.xlane.f32.xlu0 %v104_v56 }
  0xe9   :  { %213 = vadd.xlane.f32.xlu1 %v375_v55 }
  0xeb   :  { %171 = vadd.xlane.f32.xlu0 %v169_v58 }
  0xed   :  { %215 = vadd.xlane.f32.xlu1 %v377_v59 }
  0xef   :  { %221 = vadd.xlane.f32.xlu0 %v219_v62 }
  0xf1   :  { %265 = vadd.xlane.f32.xlu1 %v379_v63 }
  0xf3   :  { %271 = vadd.xlane.f32.xlu0 %v269_v1 }
  0xf5   :  { %108 = vadd.xlane.f32.xlu1 %v105_v2 }
  0xf9   :  { %173 = vadd.xlane.f32.xlu1 %v170_v4 }
  0xfd   :  { %223 = vadd.xlane.f32.xlu1 %v220_v6 }
 0x101   :  { %273 = vadd.xlane.f32.xlu1 %v270_v8 }
 0x105   :  { %140 = vadd.xlane.f32.xlu1 %v139_v16 }
 0x162   :  { %v77_v17 = vpop.xlane.xlu1 %76 }
 0x163   :  { %380 = vlog2.f32 %v77_v17 }
 0x166   :  { %v87_v18 = vpop.xlane.xlu1 %86  ;;  %v79_v20 = vpop.xlane.xlu0 %78 }
 0x16a   :  { %v89_v19 = vpop.xlane.xlu1 %88 }
 0x16d   :  { %v381_v24 = vpop.eup %380 }
 0x16e   :  { %v164_v21 = vpop.xlane.xlu1 %163  ;;  %v117_v28 = vmul.f32 0.6931472, %v381_v24 }
 0x16f   :  { %382 = vlog2.f32 %v164_v21 }
 0x170   :  { %v264_v9 = vpop.xlane.xlu0 %263  ;;  %384 = vlog2.f32 %v87_v18 }
 0x171   :  { %386 = vlog2.f32 %v79_v20 }
 0x172   :  { %v166_v22 = vpop.xlane.xlu1 %165  ;;  %388 = vlog2.f32 %v89_v19 }
 0x173   :  { %390 = vlog2.f32 %v166_v22 }
 0x174   :  { %v107_v10 = vpop.xlane.xlu0 %106  ;;  %392 = vrcp.f32 %v164_v21 }
 0x175   :  { %v120_v32 = vsub.f32 %v117_v28, %v107_v10 }
 0x176   :  { %v214_v23 = vpop.xlane.xlu1 %213 }
 0x177   :  { %394 = vlog2.f32 %v214_v23  ;;  %v122_v41 = vmul.f32 %v338_v12, %v120_v32 }
 0x178   :  { %396 = vlog2.f32 %v264_v9  ;;  %v172_v27 = vpop.xlane.xlu0 %171 }
 0x179   :  { %398 = vrcp.f32 %v166_v22  ;;  %v383_v26 = vpop.eup %382  ;;  %v125_v58 = vsel %vm124_vm4, %v122_v41, 0.0 }
 0x17a   :  { %v216_v25 = vpop.xlane.xlu1 %215  ;;  %400 = vrcp.f32 %v214_v23  ;;  %v385_v29 = vpop.eup %384  ;;  %v180_v31 = vmul.f32 0.6931472, %v383_v26 }
 0x17b   :  { %402 = vlog2.f32 %v216_v25  ;;  %v387_v30 = vpop.eup %386  ;;  %v91_v36 = vmul.f32 0.6931472, %v385_v29 }
 0x17c   :  { %404 = vrcp.f32 %v264_v9  ;;  %v389_v34 = vpop.eup %388  ;;  %v222_v38 = vpop.xlane.xlu0 %221  ;;  %v119_v39 = vmul.f32 0.6931472, %v387_v30 }
 0x17d   :  { %406 = vrcp.f32 %v216_v25  ;;  %v391_v35 = vpop.eup %390  ;;  %v183_v42 = vsub.f32 %v91_v36, %v180_v31  ;;  %v93_v52 = vmul.f32 0.6931472, %v389_v34 }
 0x17e   :  { %v266_v33 = vpop.xlane.xlu1 %265  ;;  %v393_v37 = vpop.eup %392  ;;  %v182_v45 = vmul.f32 0.6931472, %v391_v35 }
 0x17f   :  { %408 = vlog2.f32 %v266_v33  ;;  %v176_v50 = vmul.f32 %v393_v37, %v172_v27 }
 0x180   :  { %410 = vrcp.f32 %v266_v33  ;;  %v272_v61 = vpop.xlane.xlu0 %271  ;;  %v184_v62 = vsub.f32 %v93_v52, %v182_v45 }
 0x181   :  { %v395_v40 = vpop.eup %394  ;;  %v185_v55 = vadd.f32 %v183_v42, %v176_v50 }
 0x182   :  { %v109_v43 = vpop.xlane.xlu1 %108  ;;  %v397_v44 = vpop.eup %396  ;;  %v230_v46 = vmul.f32 0.6931472, %v395_v40 }
 0x183   :  { %v121_v47 = vsub.f32 %v119_v39, %v109_v43  ;;  %v399_v49 = vpop.eup %398  ;;  %v280_v1 = vmul.f32 0.6931472, %v397_v44  ;;  %v187_v12 = vsel %vm124_vm4, %v185_v55, 0.0 }
 0x184   :  { %v401_v51 = vpop.eup %400  ;;  %v233_v56 = vsub.f32 %v91_v36, %v230_v46 }
 0x185   :  { %v123_v53 = vmul.f32 %v339_v13, %v121_v47  ;;  %v403_v54 = vpop.eup %402  ;;  %v226_v2 = vmul.f32 %v401_v51, %v222_v38  ;;  %v283_v17 = vsub.f32 %v91_v36, %v280_v1 }
 0x186   :  { %v174_v57 = vpop.xlane.xlu1 %173  ;;  %v405_v59 = vpop.eup %404  ;;  %v232_v60 = vmul.f32 0.6931472, %v403_v54 }
 0x187   :  { %v178_v63 = vmul.f32 %v399_v49, %v174_v57  ;;  %v126_v0 = vsel %vm124_vm4, %v123_v53, 0.0  ;;  %v407_v4 = vpop.eup %406  ;;  %v235_v7 = vadd.f32 %v233_v56, %v226_v2  ;;  %v276_v8 = vmul.f32 %v405_v59, %v272_v61 }
 0x188   :  { %v127_v3 = vadd.f32 %v126_v0, %v125_v58  ;;  %v234_v14 = vsub.f32 %v93_v52, %v232_v60  ;;  %v300_v2 = vshrl.u32 %v94_v48, 7 }
 0x189   :  { %v186_v5 = vadd.f32 %v184_v62, %v178_v63  ;;  %v409_v6 = vpop.eup %408  ;;  %v285_v21 = vadd.f32 %v283_v17, %v276_v8  ;;  %v237_v23 = vsel %vm124_vm4, %v235_v7, 0.0 }
 0x18a   :  { %v224_v11 = vpop.xlane.xlu1 %223  ;;  %128 = vadd.xlane.f32.xlu0 %v127_v3  ;;  %v282_v13 = vmul.f32 0.6931472, %v409_v6  ;;  %v411_v20 = vpop.eup %410  ;;  %vm301_vm5 = vcmp.eq.s32.totalorder %v300_v2, 0  ;;  %vm305_vm6 = vcmp.eq.s32.totalorder %v300_v2, 1  ;;  %vm309_vm7 = vcmp.eq.s32.totalorder %v300_v2, 2 }
 0x18b   :  { %v228_v15 = vmul.f32 %v407_v4, %v224_v11  ;;  %v188_v16 = vsel %vm124_vm4, %v186_v5, 0.0  ;;  %v287_v27 = vsel %vm124_vm4, %v285_v21, 0.0  ;;  %vm313_vm8 = vcmp.eq.s32.totalorder %v300_v2, 3 }
 0x18c   :  { %v189_v18 = vadd.f32 %v188_v16, %v187_v12  ;;  %v284_v22 = vsub.f32 %v93_v52, %v282_v13  ;;  %vm317_vm9 = vcmp.eq.s32.totalorder %v300_v2, 4 }
 0x18d   :  { %v236_v19 = vadd.f32 %v234_v14, %v228_v15 }
 0x18e   :  { %v274_v9 = vpop.xlane.xlu1 %273  ;;  %190 = vadd.xlane.f32.xlu0 %v189_v18 }
 0x18f   :  { %v278_v10 = vmul.f32 %v411_v20, %v274_v9  ;;  %v238_v24 = vsel %vm124_vm4, %v236_v19, 0.0 }
 0x190   :  { %v239_v25 = vadd.f32 %v238_v24, %v237_v23 }
 0x191   :  { %v286_v26 = vadd.f32 %v284_v22, %v278_v10 }
 0x192   :  { %240 = vadd.xlane.f32.xlu1 %v239_v25  ;;  %v141_v30 = vpop.xlane.xlu1 %140 }
 0x193   :  { %v288_v28 = vsel %vm124_vm4, %v286_v26, 0.0  ;;  %v142_v31 = vrot.slane %v141_v30, 4 }
 0x194   :  { %v289_v29 = vadd.f32 %v288_v28, %v287_v27 }
 0x195   :  { %v143_v32 = vadd.f32 %v142_v31, %v141_v30 }
 0x196   :  { %290 = vadd.xlane.f32.xlu0 %v289_v29 }
 0x197   :  { %v144_v33 = vrot.slane %v143_v32, 2 }
 0x199   :  { %v145_v36 = vadd.f32 %v144_v33, %v143_v32 }
 0x19b   :  { %v146_v41 = vrot.slane %v145_v36, 1 }
 0x19d   :  { %v147_v49 = vadd.f32 %v146_v41, %v145_v36 }
 0x217   :  { %v129_v34 = vpop.xlane.xlu0 %128 }
 0x218   :  { %v130_v35 = vrot.slane %v129_v34, 4 }
 0x21a   :  { %v131_v37 = vadd.f32 %v130_v35, %v129_v34 }
 0x21b   :  { %v191_v38 = vpop.xlane.xlu0 %190 }
 0x21c   :  { %v132_v39 = vrot.slane %v131_v37, 2  ;;  %v192_v40 = vrot.slane %v191_v38, 4 }
 0x21e   :  { %v193_v42 = vadd.f32 %v192_v40, %v191_v38  ;;  %v133_v43 = vadd.f32 %v132_v39, %v131_v37 }
 0x21f   :  { %v241_v44 = vpop.xlane.xlu1 %240 }
 0x220   :  { %v194_v45 = vrot.slane %v193_v42, 2  ;;  %v242_v46 = vrot.slane %v241_v44, 4  ;;  %v134_v47 = vrot.slane %v133_v43, 1 }
 0x222   :  { %v243_v50 = vadd.f32 %v242_v46, %v241_v44  ;;  %v135_v51 = vadd.f32 %v134_v47, %v133_v43  ;;  %v195_v52 = vadd.f32 %v194_v45, %v193_v42 }
 0x223   :  { %v291_v53 = vpop.xlane.xlu0 %290 }
 0x224   :  { %v244_v54 = vrot.slane %v243_v50, 2  ;;  %v292_v55 = vrot.slane %v291_v53, 4  ;;  %340 = vpush %v135_v51  ;;  %v196_v56 = vrot.slane %v195_v52, 1 }
 0x225   :  { %342 = vpush %v147_v49 }
 0x226   :  { %v245_v57 = vadd.f32 %v244_v54, %v243_v50  ;;  %v293_v58 = vadd.f32 %v292_v55, %v291_v53  ;;  %v197_v59 = vadd.f32 %v196_v56, %v195_v52 }
 0x228   :  { %v294_v60 = vrot.slane %v293_v58, 2  ;;  %344 = vpush %v197_v59  ;;  %v246_v61 = vrot.slane %v245_v57, 1 }
 0x22a   :  { %v295_v62 = vadd.f32 %v294_v60, %v293_v58  ;;  %v247_v63 = vadd.f32 %v246_v61, %v245_v57 }
 0x22c   :  { %346 = vpush %v247_v63  ;;  %v296_v0 = vrot.slane %v295_v62, 1 }
 0x22e   :  { %v297_v1 = vadd.f32 %v296_v0, %v295_v62 }
 0x230   :  { %348 = vpush %v297_v1 }
 0x255   :  { %s341_s0 = spop %340 }
 0x256   :  { %s343_s4 = spop %342  ;;  %v302_v3 = vstv %s341_s0 }
 0x257   :  { %v306_v4 = vstv %s343_s4  ;;  %v303_v6 = vsel %vm301_vm5, %v302_v3, 0.0 }
 0x258   :  { %v307_v7 = vsel %vm305_vm6, %v306_v4, 0.0 }
 0x259   :  { %s345_s11 = spop %344  ;;  %v308_v11 = vadd.f32 %v307_v7, %v303_v6 }
 0x25a   :  { %v310_v5 = vstv %s345_s11 }
 0x25b   :  { %v311_v8 = vsel %vm309_vm7, %v310_v5, 0.0 }
 0x25c   :  { %v312_v14 = vadd.f32 %v311_v8, %v308_v11 }
 0x25d   :  { %s347_s12 = spop %346 }
 0x25e   :  { %v314_v12 = vstv %s347_s12 }
 0x25f   :  { %v315_v13 = vsel %vm313_vm8, %v314_v12, 0.0 }
 0x260   :  { %v316_v48 = vadd.f32 %v315_v13, %v312_v14 }
 0x261   :  { %s349_s13 = spop %348 }
 0x262   :  { %v318_v15 = vstv %s349_s13 }
 0x263   :  { %v319_v16 = vsel %vm317_vm9, %v318_v15, 0.0 }
 0x264   :  { %v320_v17 = vadd.f32 %v319_v16, %v316_v48 }
 0x266   :  { %321 = vst [vmem:[#allocation8] sm:$0xff] %v320_v17 }
 0x267   :  { %489 = shalt.err (!%p486_p0)
}
 0x268   :  { %s490_s18 = scalar_lea.hbm %s666_s5, 128 }
 0x269   :  { %p491_p1 = scmp.ne.s32.totalorder %s666_s5, %s490_s18  ;;  %p494_p2 = scmp.lt.u32.totalorder %s490_s18, %s666_s5 }
 0x26b   :  { %p496_p3 = pnand %p494_p2, %p491_p1 }
 0x26d   :  { %499 = shalt.err (!%p496_p3)
}
 0x26e   :  { %331 = dma.vmem_to_hbm [thread:$0]  %s329_s15, 128, %s666_s5, [#allocation4]  }
 0x26f   :  { %504 = dma.done.wait [#allocation4], 128  }
 0x270   :  { %505 = vsyncadd [#allocation4], 4294967168 }
 0x271   :  { %335 = vsyncpa [#allocation3], 1 }
 0x272   :  { %336 = vsyncpa [#allocation6], 1 }
 0x273   :  { %337 = vsyncpa [#allocation4], 1 }

</bundles_post_ra>
